<compile_context>
chip_gen: v7x
topology: tpu7x:2x2x1
jax: 0.10.0
libtpu: 0.0.40
codegen_flags: <defaults>
</compile_context>

<pallas_src>
import functools

import jax
import jax.numpy as jnp
from jax import lax
from jax.experimental import pallas as pl
from jax.experimental.pallas import tpu as pltpu

SIGMA_MAX = 2.0
SIGMA_MIN = -20.0
LANE = 128
_MIB = 1 << 20


def _round_up(x, m):
    return (x + m - 1) // m * m


def _sublane_for(dtype):
    # sub-32-bit dtypes pack along sublanes: f32 -> 8, bf16 -> 16, int8 -> 32
    return max(8, 32 // jnp.dtype(dtype).itemsize)


# ----------------------------------------------------------------------------- kernel
def actor_prob_kernel(obs_ref, w1_ref, b1_ref, w2_ref, b2_ref, wh_ref, bh_ref,
                      out_ref, *, act_dim, max_action):
    # torch.as_tensor(..., float32) + bf16 MXU-operand cast fused (free VPU work).
    x = obs_ref[...].astype(jnp.bfloat16)                                   # [tb, D]

    # preprocess Net: two Linear+ReLU blocks. bf16 operands, f32 accumulate/epilogue.
    h1 = jnp.dot(x, w1_ref[...], preferred_element_type=jnp.float32) + b1_ref[...]
    h1 = jnp.maximum(h1, 0.0).astype(jnp.bfloat16)                          # [tb, H1p]
    h2 = jnp.dot(h1, w2_ref[...], preferred_element_type=jnp.float32) + b2_ref[...]
    h2 = jnp.maximum(h2, 0.0).astype(jnp.bfloat16)                          # [tb, H2p]

    # fused (mu || sigma) head: single MXU pass, lane-dense [tb, Op] result
    z = jnp.dot(h2, wh_ref[...], preferred_element_type=jnp.float32) + bh_ref[...]

    # (1, Op) column selector: 1 vreg; sublane-broadcast inside jnp.where is free.
    col = lax.broadcasted_iota(jnp.int32, (1, z.shape[-1]), 1)
    mu = max_action * jnp.tanh(z)                                # EUP tanh
    sigma = jnp.exp(jnp.clip(z, SIGMA_MIN, SIGMA_MAX))           # EUP exp
    # cols [0, A): mu   cols [A, 2A): sigma   cols >= 2A: padding (exp(0)=1, discarded)
    out_ref[...] = jnp.where(col < act_dim, mu, sigma).astype(out_ref.dtype)


# -------------------------------------------------------------------- param preparation
def prepare_params(params, weight_dtype=jnp.bfloat16):
    """One-time: fuse mu/sigma heads, zero-pad feature dims to lane width, cast weights."""
    w1, b1 = params["w1"], params["b1"]
    w2, b2 = params["w2"], params["b2"]
    wmu, bmu = params["wmu"], params["bmu"]
    ws, bs = params["ws"], params["bs"]

    D, H1 = w1.shape
    H2 = w2.shape[1]
    A = wmu.shape[1]

    H1p = _round_up(H1, LANE)
    H2p = _round_up(H2, LANE)
    Op = _round_up(2 * A, LANE)

    def pad2(a, rows, cols):
        return jnp.pad(a, ((0, rows - a.shape[0]), (0, cols - a.shape[1])))

    wh = jnp.concatenate([wmu, ws], axis=1)          # [H2, 2A]  fused head weights
    bh = jnp.concatenate([bmu, bs], axis=1)          # [1, 2A]

    return dict(
        # weights in bf16 (MXU-native on v5e/v6e/v7x, halves weight DMA);
        # biases kept f32 (tiny, full-precision epilogue add).
        w1=pad2(w1, D, H1p).astype(weight_dtype), b1=pad2(b1, 1, H1p).astype(jnp.float32),
        w2=pad2(w2, H1p, H2p).astype(weight_dtype), b2=pad2(b2, 1, H2p).astype(jnp.float32),
        wh=pad2(wh, H2p, Op).astype(weight_dtype), bh=pad2(bh, 1, Op).astype(jnp.float32),
        act_dim=A,
    )


# ---------------------------------------------------------------------- tile selection
def _pick_batch_tile(B, stream_row_bytes, sublane, vmem_stream_budget, max_tile):
    """Largest sublane-aligned batch tile whose double-buffered streamed footprint fits
    the VMEM budget, then split to >= 2 grid steps (v7x megacore) when batch allows."""
    b_aligned = _round_up(B, sublane)
    per_row = 2 * stream_row_bytes                     # obs in + packed out, 2 buffers
    tb_cap = max(sublane, (vmem_stream_budget // per_row) // sublane * sublane)
    tb = min(max_tile, b_aligned, tb_cap)
    if tb >= b_aligned and b_aligned >= 2 * sublane:
        # grid would collapse to (1,): one v7x TensorCore idles. Split in two.
        tb = _round_up((b_aligned + 1) // 2, sublane)
    return tb


# ------------------------------------------------------------------------------ wrapper
def actor_prob_forward(obs, prepared, state=None, max_action=1.0,
                       max_tile_b=2048, vmem_stream_budget_bytes=12 * _MIB):
    """Returns ((mu, sigma), state) — same contract as ActorProb.forward."""
    B = obs.shape[0]
    obs_flat = obs.reshape(B, -1)          # torch flatten(1); free reshape, cast in-kernel
    D = obs_flat.shape[1]

    w1, b1 = prepared["w1"], prepared["b1"]
    w2, b2 = prepared["w2"], prepared["b2"]
    wh, bh = prepared["wh"], prepared["bh"]
    A = prepared["act_dim"]
    H1p, H2p, Op = w1.shape[1], w2.shape[1], wh.shape[1]

    out_dtype = jnp.bfloat16   # halves packed-output HBM writeback; wrapper casts back
    sublane = max(_sublane_for(obs_flat.dtype), _sublane_for(out_dtype))
    obs_row_bytes = D * jnp.dtype(obs_flat.dtype).itemsize
    out_row_bytes = Op * jnp.dtype(out_dtype).itemsize

    tb = _pick_batch_tile(B, obs_row_bytes + out_row_bytes, sublane,
                          vmem_stream_budget_bytes, max_tile_b)
    Bp = _round_up(B, tb)
    if Bp != B:
        obs_flat = jnp.pad(obs_flat, ((0, Bp - B), (0, 0)))
    grid = (Bp // tb,)

    # Resident parameters: single-buffer once big enough to matter (saves ~param_bytes
    # of VMEM on v7x's 64 MiB); irrelevant (and not triggered) at tiny hidden sizes.
    param_bytes = sum(int(a.size) * a.dtype.itemsize for a in (w1, b1, w2, b2, wh, bh))
    single_buffer_weights = param_bytes > 4 * _MIB

    def resident_spec(shape):
        if single_buffer_weights:
            return pl.BlockSpec(shape, lambda i: (0, 0), pipeline_mode=pl.Buffered(1))
        return pl.BlockSpec(shape, lambda i: (0, 0))

    stream_bytes = 2 * tb * (obs_row_bytes + out_row_bytes)
    needed = (1 if single_buffer_weights else 2) * param_bytes + stream_bytes + _MIB
    vmem_limit = int(min(max(2 * needed, 32 * _MIB), 64 * _MIB))

    flops = 2 * Bp * (D * H1p + H1p * H2p + H2p * Op)
    bytes_accessed = Bp * obs_row_bytes + Bp * out_row_bytes + param_bytes

    kernel = functools.partial(actor_prob_kernel, act_dim=A, max_action=max_action)

    out = pl.pallas_call(
        kernel,
        out_shape=jax.ShapeDtypeStruct((Bp, Op), out_dtype),
        grid_spec=pltpu.PrefetchScalarGridSpec(
            num_scalar_prefetch=0,
            grid=grid,
            in_specs=[
                pl.BlockSpec((tb, D), lambda i: (i, 0)),   # obs: streamed over batch
                resident_spec((D, H1p)),                   # weights/biases: resident
                resident_spec((1, H1p)),
                resident_spec((H1p, H2p)),
                resident_spec((1, H2p)),
                resident_spec((H2p, Op)),
                resident_spec((1, Op)),
            ],
            out_specs=pl.BlockSpec((tb, Op), lambda i: (i, 0)),
        ),
        compiler_params=pltpu.CompilerParams(
            dimension_semantics=("parallel",),
            vmem_limit_bytes=vmem_limit,
        ),
        cost_estimate=pl.CostEstimate(flops=flops,
                                      transcendentals=2 * Bp * Op,
                                      bytes_accessed=bytes_accessed),
    )(obs_flat, w1, b1, w2, b2, wh, bh)

    mu = out[:B, :A].astype(jnp.float32)
    sigma = out[:B, A:2 * A].astype(jnp.float32)
    return (mu, sigma), state


# --------------------------------------------------------------------- synthetic params
def init_params(key, in_dim, h1, h2, act_dim):
    """Deterministic synthetic parameters (uniform, PyTorch-Linear-like scale)."""
    ks = jax.random.split(key, 8)

    def lin(kw, kb, fan_in, fan_out):
        bound = 1.0 / jnp.sqrt(fan_in)
        w = jax.random.uniform(kw, (fan_in, fan_out), jnp.float32, -bound, bound)
        b = jax.random.uniform(kb, (1, fan_out), jnp.float32, -bound, bound)
        return w, b

    w1, b1 = lin(ks[0], ks[1], in_dim, h1)
    w2, b2 = lin(ks[2], ks[3], h1, h2)
    wmu, bmu = lin(ks[4], ks[5], h2, act_dim)
    ws, bs = lin(ks[6], ks[7], h2, act_dim)
    return dict(w1=w1, b1=b1, w2=w2, b2=b2, wmu=wmu, bmu=bmu, ws=ws, bs=bs)


def reference_forward(obs, params, max_action=1.0):
    """Pure-JAX f32 reference (matches the PyTorch forward)."""
    x = obs.reshape(obs.shape[0], -1).astype(jnp.float32)
    h1 = jnp.maximum(x @ params["w1"] + params["b1"], 0.0)
    h2 = jnp.maximum(h1 @ params["w2"] + params["b2"], 0.0)
    mu = max_action * jnp.tanh(h2 @ params["wmu"] + params["bmu"])
    sigma = jnp.exp(jnp.clip(h2 @ params["ws"] + params["bs"], SIGMA_MIN, SIGMA_MAX))
    return mu, sigma


if __name__ == "__main__":
    key = jax.random.PRNGKey(0)
    k_obs, k_params, k_obs2 = jax.random.split(key, 3)

    # Small shapes: batch=8, state_shape=(4, 4) -> flattened D=16,
    # preprocess hidden_sizes=(32, 32), action_dim=8.
    B, D, H1, H2, A = 8, 16, 32, 32, 8
    obs = jax.random.normal(k_obs, (B, 4, 4), jnp.float32)   # [batch, *state_shape]
    params = init_params(k_params, D, H1, H2, A)
    prepared = prepare_params(params)                        # one-time fuse + lane-pad + bf16

    (mu, sigma), state = actor_prob_forward(obs, prepared, state=None)
    jax.block_until_ready((mu, sigma))

    mu_ref, sigma_ref = reference_forward(obs, params)
    assert mu.shape == (B, A) and sigma.shape == (B, A)
    # bf16 MXU operands + bf16 packed output -> compare against f32 reference at 2e-2
    assert jnp.allclose(mu, mu_ref, atol=2e-2, rtol=2e-2)
    assert jnp.allclose(sigma, sigma_ref, atol=2e-2, rtol=2e-2)
    assert state is None

    # Second check: non-multiple batch -> padding, adaptive tile, >=2 grid steps.
    B2 = 300
    obs2 = jax.random.normal(k_obs2, (B2, 4, 4), jnp.float32)
    (mu2, sigma2), _ = actor_prob_forward(obs2, prepared, state=None)
    jax.block_until_ready((mu2, sigma2))
    mu2_ref, sigma2_ref = reference_forward(obs2, params)
    assert mu2.shape == (B2, A) and sigma2.shape == (B2, A)
    assert jnp.allclose(mu2, mu2_ref, atol=2e-2, rtol=2e-2)
    assert jnp.allclose(sigma2, sigma2_ref, atol=2e-2, rtol=2e-2)

    print("KERNEL_OK")
</pallas_src>

<mosaic_0001>
module attributes {stable_mosaic.version = 11 : i64} {
  func.func @actor_prob_kernel(%arg0: i32, %arg1: memref<16x16xf32, #tpu.memory_space<vmem>>, %arg2: memref<16x128xbf16, #tpu.memory_space<vmem>>, %arg3: memref<1x128xf32, #tpu.memory_space<vmem>>, %arg4: memref<128x128xbf16, #tpu.memory_space<vmem>>, %arg5: memref<1x128xf32, #tpu.memory_space<vmem>>, %arg6: memref<128x128xbf16, #tpu.memory_space<vmem>>, %arg7: memref<1x128xf32, #tpu.memory_space<vmem>>, %arg8: memref<16x128xbf16, #tpu.memory_space<vmem>>) attributes {dimension_semantics = [#tpu.dimension_semantics<parallel>], iteration_bounds = array<i64: 1>, scalar_prefetch = 0 : i64, scratch_operands = 0 : i64, tpu.core_type = #tpu.core_type<tc>, window_params = [{transform_indices = @transform_0, window_bounds = array<i64: 16, 16>}, {pipeline_mode = #tpu.pipeline_mode<synchronous>, transform_indices = @transform_1, window_bounds = array<i64: 16, 128>}, {pipeline_mode = #tpu.pipeline_mode<synchronous>, transform_indices = @transform_2, window_bounds = array<i64: 1, 128>}, {pipeline_mode = #tpu.pipeline_mode<synchronous>, transform_indices = @transform_3, window_bounds = array<i64: 128, 128>}, {pipeline_mode = #tpu.pipeline_mode<synchronous>, transform_indices = @transform_4, window_bounds = array<i64: 1, 128>}, {pipeline_mode = #tpu.pipeline_mode<synchronous>, transform_indices = @transform_5, window_bounds = array<i64: 128, 128>}, {pipeline_mode = #tpu.pipeline_mode<synchronous>, transform_indices = @transform_6, window_bounds = array<i64: 1, 128>}, {transform_indices = @transform_7, window_bounds = array<i64: 16, 128>}]} {
    %c0 = arith.constant 0 : index
    %c0_0 = arith.constant 0 : index
    %0 = vector.load %arg1[%c0, %c0_0] : memref<16x16xf32, #tpu.memory_space<vmem>>, vector<16x16xf32>
    %1 = arith.truncf %0 : vector<16x16xf32> to vector<16x16xbf16>
    %c0_1 = arith.constant 0 : index
    %c0_2 = arith.constant 0 : index
    %2 = vector.load %arg2[%c0_1, %c0_2] : memref<16x128xbf16, #tpu.memory_space<vmem>>, vector<16x128xbf16>
    %cst = arith.constant dense<0.000000e+00> : vector<16x128xf32>
    %3 = tpu.matmul %1, %2, %cst {dimension_numbers = #tpu.dot_dimension_numbers<[1], [0], [0], [1], [0, 0, 1, 1], [], []>} : vector<16x16xbf16>, vector<16x128xbf16>, vector<16x128xf32> -> vector<16x128xf32>
    %c0_3 = arith.constant 0 : index
    %c0_4 = arith.constant 0 : index
    %4 = vector.load %arg3[%c0_3, %c0_4] : memref<1x128xf32, #tpu.memory_space<vmem>>, vector<1x128xf32>
    %5 = vector.broadcast %4 : vector<1x128xf32> to vector<16x128xf32>
    %6 = arith.addf %3, %5 : vector<16x128xf32>
    %cst_5 = arith.constant 0.000000e+00 : f32
    %7 = vector.broadcast %cst_5 : f32 to vector<16x128xf32>
    %8 = arith.maximumf %6, %7 : vector<16x128xf32>
    %9 = arith.truncf %8 : vector<16x128xf32> to vector<16x128xbf16>
    %c0_6 = arith.constant 0 : index
    %c0_7 = arith.constant 0 : index
    %10 = vector.load %arg4[%c0_6, %c0_7] : memref<128x128xbf16, #tpu.memory_space<vmem>>, vector<128x128xbf16>
    %cst_8 = arith.constant dense<0.000000e+00> : vector<16x128xf32>
    %11 = tpu.matmul %9, %10, %cst_8 {dimension_numbers = #tpu.dot_dimension_numbers<[1], [0], [0], [1], [0, 0, 1, 1], [], []>} : vector<16x128xbf16>, vector<128x128xbf16>, vector<16x128xf32> -> vector<16x128xf32>
    %c0_9 = arith.constant 0 : index
    %c0_10 = arith.constant 0 : index
    %12 = vector.load %arg5[%c0_9, %c0_10] : memref<1x128xf32, #tpu.memory_space<vmem>>, vector<1x128xf32>
    %13 = vector.broadcast %12 : vector<1x128xf32> to vector<16x128xf32>
    %14 = arith.addf %11, %13 : vector<16x128xf32>
    %cst_11 = arith.constant 0.000000e+00 : f32
    %15 = vector.broadcast %cst_11 : f32 to vector<16x128xf32>
    %16 = arith.maximumf %14, %15 : vector<16x128xf32>
    %17 = arith.truncf %16 : vector<16x128xf32> to vector<16x128xbf16>
    %c0_12 = arith.constant 0 : index
    %c0_13 = arith.constant 0 : index
    %18 = vector.load %arg6[%c0_12, %c0_13] : memref<128x128xbf16, #tpu.memory_space<vmem>>, vector<128x128xbf16>
    %cst_14 = arith.constant dense<0.000000e+00> : vector<16x128xf32>
    %19 = tpu.matmul %17, %18, %cst_14 {dimension_numbers = #tpu.dot_dimension_numbers<[1], [0], [0], [1], [0, 0, 1, 1], [], []>} : vector<16x128xbf16>, vector<128x128xbf16>, vector<16x128xf32> -> vector<16x128xf32>
    %c0_15 = arith.constant 0 : index
    %c0_16 = arith.constant 0 : index
    %20 = vector.load %arg7[%c0_15, %c0_16] : memref<1x128xf32, #tpu.memory_space<vmem>>, vector<1x128xf32>
    %21 = vector.broadcast %20 : vector<1x128xf32> to vector<16x128xf32>
    %22 = arith.addf %19, %21 : vector<16x128xf32>
    %23 = tpu.iota {dimensions = array<i32: 1>} : vector<1x128xi32>
    %24 = math.tanh %22 : vector<16x128xf32>
    %cst_17 = arith.constant 1.000000e+00 : f32
    %25 = vector.broadcast %cst_17 : f32 to vector<16x128xf32>
    %26 = arith.mulf %25, %24 : vector<16x128xf32>
    %cst_18 = arith.constant -2.000000e+01 : f32
    %cst_19 = arith.constant 2.000000e+00 : f32
    %27 = vector.broadcast %cst_18 : f32 to vector<16x128xf32>
    %28 = arith.maximumf %27, %22 : vector<16x128xf32>
    %29 = vector.broadcast %cst_19 : f32 to vector<16x128xf32>
    %30 = arith.minimumf %29, %28 : vector<16x128xf32>
    %31 = math.exp %30 : vector<16x128xf32>
    %c8_i32 = arith.constant 8 : i32
    %32 = vector.broadcast %c8_i32 : i32 to vector<1x128xi32>
    %33 = arith.cmpi slt, %23, %32 : vector<1x128xi32>
    %34 = vector.shape_cast %33 : vector<1x128xi1> to vector<1x128xi1>
    %35 = vector.broadcast %34 : vector<1x128xi1> to vector<16x128xi1>
    %36 = arith.select %35, %26, %31 : vector<16x128xi1>, vector<16x128xf32>
    %37 = arith.truncf %36 : vector<16x128xf32> to vector<16x128xbf16>
    %c0_20 = arith.constant 0 : index
    %c0_21 = arith.constant 0 : index
    %38 = vector.load %arg8[%c0_20, %c0_21] : memref<16x128xbf16, #tpu.memory_space<vmem>>, vector<16x128xbf16>
    tpu.vector_store %arg8[%c0_20, %c0_21], %37 {strides = array<i32>} : memref<16x128xbf16, #tpu.memory_space<vmem>>, vector<16x128xbf16>,
    return
  }
  func.func @transform_0(%arg0: i32) -> (i32, i32) {
    %c0_i32 = arith.constant 0 : i32
    %c0_i32_0 = arith.constant 0 : i32
    return %arg0, %c0_i32 : i32, i32
  }
  func.func @transform_1(%arg0: i32) -> (i32, i32) {
    %c0_i32 = arith.constant 0 : i32
    %c0_i32_0 = arith.constant 0 : i32
    %c0_i32_1 = arith.constant 0 : i32
    return %c0_i32, %c0_i32_0 : i32, i32
  }
  func.func @transform_2(%arg0: i32) -> (i32, i32) {
    %c0_i32 = arith.constant 0 : i32
    %c0_i32_0 = arith.constant 0 : i32
    %c0_i32_1 = arith.constant 0 : i32
    return %c0_i32, %c0_i32_0 : i32, i32
  }
  func.func @transform_3(%arg0: i32) -> (i32, i32) {
    %c0_i32 = arith.constant 0 : i32
    %c0_i32_0 = arith.constant 0 : i32
    %c0_i32_1 = arith.constant 0 : i32
    return %c0_i32, %c0_i32_0 : i32, i32
  }
  func.func @transform_4(%arg0: i32) -> (i32, i32) {
    %c0_i32 = arith.constant 0 : i32
    %c0_i32_0 = arith.constant 0 : i32
    %c0_i32_1 = arith.constant 0 : i32
    return %c0_i32, %c0_i32_0 : i32, i32
  }
  func.func @transform_5(%arg0: i32) -> (i32, i32) {
    %c0_i32 = arith.constant 0 : i32
    %c0_i32_0 = arith.constant 0 : i32
    %c0_i32_1 = arith.constant 0 : i32
    return %c0_i32, %c0_i32_0 : i32, i32
  }
  func.func @transform_6(%arg0: i32) -> (i32, i32) {
    %c0_i32 = arith.constant 0 : i32
    %c0_i32_0 = arith.constant 0 : i32
    %c0_i32_1 = arith.constant 0 : i32
    return %c0_i32, %c0_i32_0 : i32, i32
  }
  func.func @transform_7(%arg0: i32) -> (i32, i32) {
    %c0_i32 = arith.constant 0 : i32
    %c0_i32_0 = arith.constant 0 : i32
    return %arg0, %c0_i32 : i32, i32
  }
}

</mosaic_0001>

<bundles_post_ra>
// kernel: tpu_custom_call.1
= control target key start
LH: loop header
LB: loop body
LE: loop exit
PB: predicated region body
PF: predicated region fallthrough
CT: control target
= control target key end

     0   :  { %12 = vsyncpa [#allocation3], 0  ;;  %s834_s0 = inlined_call_operand.hbm [shape: f32[16,16], index: 0, kind: input, shape index: {}]   ;;  %s835_s1 = inlined_call_operand.hbm [shape: bf16[16,128], index: 1, kind: input, shape index: {}]   ;;  %s836_s2 = inlined_call_operand.vmem [shape: f32[1,128], index: 2, kind: input, shape index: {}]   ;;  %s837_s3 = inlined_call_operand.hbm [shape: bf16[128,128], index: 3, kind: input, shape index: {}]   ;;  %s838_s4 = inlined_call_operand.vmem [shape: f32[1,128], index: 4, kind: input, shape index: {}]   ;;  %s839_s5 = inlined_call_operand.hbm [shape: bf16[128,128], index: 5, kind: input, shape index: {}]   ;;  %s840_s6 = inlined_call_operand.vmem [shape: f32[1,128], index: 6, kind: input, shape index: {}]   ;;  %s841_s7 = inlined_call_operand.hbm [shape: bf16[16,128], index: 7, kind: output, shape index: {}]  }
   0x1   :  { %13 = vsyncpa [#allocation6], 0 }
   0x2   :  { %14 = vsyncpa [#allocation9], 0 }
   0x3   :  { %15 = vsyncpa [#allocation4], 0  ;;  %s672_s24 = smov [#allocation5]   ;;  %s554_s28 = scalar_lea.hbm %s835_s1, 128 }
   0x4   :  { %s33_s25 = sshll.u32 %s672_s24, 4  ;;  %p555_p0 = scmp.ne.s32.totalorder %s835_s1, %s554_s28  ;;  %s34_s25 = int_to_ptr.vmem [resolvable:$true] %s33_s25 }
   0x5   :  { %p558_p1 = scmp.lt.u32.totalorder %s554_s28, %s835_s1 }
   0x7   :  { %p560_p2 = pnand %p558_p1, %p555_p0 }
   0x9   :  { %563 = shalt.err (!%p560_p2)
}
   0xa   :  { %s564_s10 = scalar_lea.vmem %s34_s25, 128  ;;  %p569_p4 = scmp.lt.s32.totalorder %s34_s25, %s34_s25 }
   0xb   :  { %p565_p3 = scmp.ne.s32.totalorder %s34_s25, %s564_s10  ;;  %p570_p5 = scmp.lt.s32.totalorder %s564_s10, %s564_s10 }
   0xd   :  { %p571_p6 = por %p570_p5, %p569_p4 }
   0xf   :  { %p572_p7 = pnand %p571_p6, %p565_p3 }
  0x11   :  { %575 = shalt.err (!%p572_p7)
}
  0x12   :  { %s673_s11 = smov 64   ;;  %s674_s12 = smov 4  }
  0x13   :  { %39 = dma.hbm_to_vmem [thread:$0]  %s835_s1, 128, %s34_s25, [#allocation6], %s673_s11, %s673_s11, %s674_s12  }
  0x14   :  { %s675_s15 = smov [#allocation2]   ;;  %s576_s19 = scalar_lea.hbm %s834_s0, 256 }
  0x15   :  { %s21_s16 = sshll.u32 %s675_s15, 4  ;;  %p577_p8 = scmp.ne.s32.totalorder %s834_s0, %s576_s19  ;;  %s22_s16 = int_to_ptr.vmem [resolvable:$true] %s21_s16 }
  0x16   :  { %p580_p9 = scmp.lt.u32.totalorder %s576_s19, %s834_s0 }
  0x18   :  { %p582_p10 = pnand %p580_p9, %p577_p8 }
  0x1a   :  { %585 = shalt.err (!%p582_p10)
}
  0x1b   :  { %s586_s24 = scalar_lea.vmem %s22_s16, 256  ;;  %p591_p12 = scmp.lt.s32.totalorder %s22_s16, %s22_s16 }
  0x1c   :  { %p587_p11 = scmp.ne.s32.totalorder %s22_s16, %s586_s24  ;;  %p592_p13 = scmp.lt.s32.totalorder %s586_s24, %s586_s24 }
  0x1e   :  { %p593_p0 = por %p592_p13, %p591_p12 }
  0x20   :  { %p594_p1 = pnand %p593_p0, %p587_p11 }
  0x22   :  { %597 = shalt.err (!%p594_p1)
}
  0x23   :  { %s676_s1 = smov 128   ;;  %s677_s25 = smov 8  }
  0x24   :  { %27 = dma.hbm_to_vmem [thread:$0]  %s834_s0, 256, %s22_s16, [#allocation3], %s676_s1, %s676_s1, %s677_s25  }
  0x25   :  { %s678_s28 = smov [#allocation7]   ;;  %s679_s30 = smov [#allocation8]  }
  0x26   :  { %s47_s29 = sshll.u32 %s678_s28, 4  ;;  %s61_s8 = sshll.u32 %s679_s30, 4  ;;  %s48_s29 = int_to_ptr.vmem [resolvable:$true] %s47_s29  ;;  %s750_s8 = int_to_ptr.vmem [resolvable:$true] %s61_s8 }
  0x27   :  { %s598_s13 = scalar_lea.hbm %s837_s3, 1024 }
  0x28   :  { %p599_p2 = scmp.ne.s32.totalorder %s837_s3, %s598_s13  ;;  %p602_p3 = scmp.lt.u32.totalorder %s598_s13, %s837_s3 }
  0x2a   :  { %p604_p4 = pnand %p602_p3, %p599_p2 }
  0x2c   :  { %607 = shalt.err (!%p604_p4)
}
  0x2d   :  { %s608_s0 = scalar_lea.vmem %s48_s29, 1024  ;;  %p613_p6 = scmp.lt.s32.totalorder %s48_s29, %s48_s29 }
  0x2e   :  { %p609_p5 = scmp.ne.s32.totalorder %s48_s29, %s608_s0  ;;  %p614_p7 = scmp.lt.s32.totalorder %s608_s0, %s608_s0 }
  0x30   :  { %p615_p8 = por %p614_p7, %p613_p6 }
  0x32   :  { %p616_p9 = pnand %p615_p8, %p609_p5 }
  0x34   :  { %619 = shalt.err (!%p616_p9)
}
  0x35   :  { %53 = dma.hbm_to_vmem [thread:$0]  %s837_s3, 1024, %s48_s29, [#allocation6], %s673_s11, %s673_s11, %s674_s12  }
  0x36   :  { %s620_s22 = scalar_lea.hbm %s839_s5, 1024 }
  0x37   :  { %p621_p10 = scmp.ne.s32.totalorder %s839_s5, %s620_s22  ;;  %p624_p11 = scmp.lt.u32.totalorder %s620_s22, %s839_s5 }
  0x39   :  { %p626_p12 = pnand %p624_p11, %p621_p10 }
  0x3b   :  { %629 = shalt.err (!%p626_p12)
}
  0x3c   :  { %s630_s26 = scalar_lea.vmem %s750_s8, 1024  ;;  %p635_p0 = scmp.lt.s32.totalorder %s750_s8, %s750_s8 }
  0x3d   :  { %p631_p13 = scmp.ne.s32.totalorder %s750_s8, %s630_s26  ;;  %p636_p1 = scmp.lt.s32.totalorder %s630_s26, %s630_s26 }
  0x3f   :  { %p637_p2 = por %p636_p1, %p635_p0 }
  0x41   :  { %p638_p3 = pnand %p637_p2, %p631_p13 }
  0x43   :  { %641 = shalt.err (!%p638_p3)
}
  0x44   :  { %67 = dma.hbm_to_vmem [thread:$0]  %s839_s5, 1024, %s750_s8, [#allocation9], %s673_s11, %s673_s11, %s674_s12  }
  0x45   :  { %664 = dma.done.wait [#allocation3], 256  }
  0x46   :  { %665 = vsyncadd [#allocation3], 4294967040 }
  0x47   :  { %666 = dma.done.wait [#allocation6], 1152  }
  0x48   :  { %667 = vsyncadd [#allocation6], 4294966144 }
  0x49   :  { %668 = dma.done.wait [#allocation9], 1024  }
  0x4a   :  { %669 = vsyncadd [#allocation9], 4294966272  ;;  %v680_v0 = vmov 0.0   ;;  %vm681_vm0 = vmmov 0   ;;  %v529_v1 = vld [vmem:[#allocation5] sm:$0xff]   ;;  %v83_v2 = vld [vmem:[#allocation2] sm:$0xff]  ;;  %v376_v54 = vlaneseq }
  0x4b   :  { %472 = vmatprep.subr.bf16.mxu0 %v680_v0  ;;  %474 = vmatprep.mubr.msk.bf16.mxu0 %vm681_vm0, %v680_v0  ;;  %v84_v3 = vld [vmem:[#allocation2 + $0x8] sm:$0xff]  ;;  %vm101_vm1 = vcmask 130048   ;;  %v530_v5 = vld [vmem:[#allocation7] sm:$0xff]   ;;  %v531_v6 = vld [vmem:[#allocation7 + $0x8] sm:$0xff]  }
  0x4c   :  { %478 = vmatprep.subr.bf16.mxu1 %v680_v0  ;;  %494 = vmatprep.mubr.msk.bf16.mxu1 %vm681_vm0, %v680_v0  ;;  %v85_v4 = vpack.c.bf16 %v84_v3, %v83_v2  ;;  %v532_v7 = vld [vmem:[#allocation7 + $0x10] sm:$0xff]   ;;  %v533_v8 = vld [vmem:[#allocation7 + $0x18] sm:$0xff]   ;;  %v534_v9 = vld [vmem:[#allocation7 + $0x20] sm:$0xff]   ;;  %v377_v55 = vand.u32 127, %v376_v54 }
  0x4d   :  { %473 = vmatpush3.bf16.msra.mxu0 %v529_v1  ;;  %479 = vmatpush3.bf16.msra.mxu1 %v530_v5  ;;  %v535_v10 = vld [vmem:[#allocation7 + $0x28] sm:$0xff]   ;;  %v536_v11 = vld [vmem:[#allocation7 + $0x30] sm:$0xff]   ;;  %v537_v12 = vld [vmem:[#allocation7 + $0x38] sm:$0xff]  }
  0x4e   :  { %498 = vmatprep.subr.bf16.mxu0 %v680_v0  ;;  %480 = vmatprep.subr.bf16.mxu1 %v680_v0  ;;  %v538_v13 = vld [vmem:[#allocation8] sm:$0xff]   ;;  %v539_v14 = vld [vmem:[#allocation8 + $0x8] sm:$0xff]   ;;  %v540_v15 = vld [vmem:[#allocation8 + $0x10] sm:$0xff]   ;;  %vm388_vm2 = vcmp.lt.s32.totalorder %v377_v55, 8 }
  0x4f   :  { %v541_v16 = vld [vmem:[#allocation8 + $0x18] sm:$0xff]   ;;  %v542_v17 = vld [vmem:[#allocation8 + $0x20] sm:$0xff]   ;;  %v543_v18 = vld [vmem:[#allocation8 + $0x28] sm:$0xff]  }
  0x50   :  { %475 = vmatmul.mubr.msk.bf16.vlgmr.msra.gmra.mrb[0].mxu0 %vm101_vm1, %v85_v4  ;;  %v422_v19 = vld [vmem:[%s836_s2] ss:$0 sm:$0xff]  ;;  %v544_v29 = vld [vmem:[#allocation8 + $0x30] sm:$0xff]   ;;  %v545_v30 = vld [vmem:[#allocation8 + $0x38] sm:$0xff]  }
  0x51   :  { %514 = vmatprep.mubr.msk.bf16.mxu0 %vm681_vm0, %v680_v0  ;;  %481 = vmatpush3.bf16.msra.mxu1 %v531_v6  ;;  %v425_v31 = vld [vmem:[%s838_s4] ss:$0 sm:$0xff]  ;;  %s682_s4 = smov [#allocation10]  }
  0x52   :  { %482 = vmatprep.subr.bf16.mxu1 %v680_v0  ;;  %499 = vmatpush3.bf16.msra.mxu0 %v538_v13  ;;  %v434_v41 = vld [vmem:[%s840_s6] ss:$0 sm:$0xff]  ;;  %s408_s6 = sshll.u32 %s682_s4, 4  ;;  %s409_s6 = int_to_ptr.vmem [resolvable:$true] %s408_s6 }
  0x53   :  { %500 = vmatprep.subr.bf16.mxu0 %v680_v0  ;;  %s642_s9 = scalar_lea.vmem %s409_s6, 128  ;;  %p647_p5 = scmp.lt.s32.totalorder %s409_s6, %s409_s6 }
  0x54   :  { %p643_p4 = scmp.ne.s32.totalorder %s409_s6, %s642_s9  ;;  %p648_p6 = scmp.lt.s32.totalorder %s642_s9, %s642_s9 }
  0x55   :  { %483 = vmatpush3.bf16.msra.mxu1 %v532_v7 }
  0x56   :  { %484 = vmatprep.subr.bf16.mxu1 %v680_v0  ;;  %501 = vmatpush3.bf16.msra.mxu0 %v539_v14  ;;  %p649_p7 = por %p648_p6, %p647_p5 }
  0x57   :  { %502 = vmatprep.subr.bf16.mxu0 %v680_v0 }
  0x58   :  { %p650_p8 = pnand %p649_p7, %p643_p4 }
  0x59   :  { %485 = vmatpush3.bf16.msra.mxu1 %v533_v8 }
  0x5a   :  { %486 = vmatprep.subr.bf16.mxu1 %v680_v0  ;;  %503 = vmatpush3.bf16.msra.mxu0 %v540_v15 }
  0x5b   :  { %504 = vmatprep.subr.bf16.mxu0 %v680_v0 }
  0x5d   :  { %487 = vmatpush3.bf16.msra.mxu1 %v534_v9 }
  0x5e   :  { %488 = vmatprep.subr.bf16.mxu1 %v680_v0  ;;  %505 = vmatpush3.bf16.msra.mxu0 %v541_v16 }
  0x5f   :  { %506 = vmatprep.subr.bf16.mxu0 %v680_v0 }
  0x61   :  { %489 = vmatpush3.bf16.msra.mxu1 %v535_v10 }
  0x62   :  { %490 = vmatprep.subr.bf16.mxu1 %v680_v0  ;;  %507 = vmatpush3.bf16.msra.mxu0 %v542_v17 }
  0x63   :  { %508 = vmatprep.subr.bf16.mxu0 %v680_v0 }
  0x65   :  { %491 = vmatpush3.bf16.msra.mxu1 %v536_v11 }
  0x66   :  { %492 = vmatprep.subr.bf16.mxu1 %v680_v0  ;;  %509 = vmatpush3.bf16.msra.mxu0 %v543_v18 }
  0x67   :  { %510 = vmatprep.subr.bf16.mxu0 %v680_v0 }
  0x69   :  { %493 = vmatpush3.bf16.msra.mxu1 %v537_v12 }
  0x6a   :  { %511 = vmatpush3.bf16.msra.mxu0 %v544_v29 }
  0x6b   :  { %512 = vmatprep.subr.bf16.mxu0 %v680_v0 }
  0x6e   :  { %513 = vmatpush3.bf16.msra.mxu0 %v545_v30 }
 0x123   :  { %v139_v20 = vpop.f32.mrb[0].mxu0 }
 0x124   :  { %v140_v21 = vadd.f32 %v422_v19, %v139_v20  ;;  %v476_v22 = vpop.f32.mrb[1].mxu0 }
 0x125   :  { %v142_v23 = vpop.f32.mrb[2].mxu0 }
 0x126   :  { %v143_v24 = vadd.f32 %v422_v19, %v142_v23  ;;  %v477_v25 = vpop.f32.mrb[3].mxu0  ;;  %v146_v26 = vmax.f32 %v140_v21, 0.0 }
 0x128   :  { %v147_v27 = vmax.f32 %v143_v24, 0.0 }
 0x12a   :  { %v148_v28 = vpack.c.bf16 %v147_v27, %v146_v26 }
 0x12c   :  { %495 = vmatmul.mubr.bf16.vlgmr.msra.gmra.mrb[0].mxu1 %v148_v28 }
 0x1ff   :  { %v254_v32 = vpop.f32.mrb[0].mxu1 }
 0x200   :  { %v255_v33 = vadd.f32 %v425_v31, %v254_v32  ;;  %v496_v34 = vpop.f32.mrb[1].mxu1 }
 0x201   :  { %v257_v35 = vpop.f32.mrb[2].mxu1 }
 0x202   :  { %v258_v36 = vadd.f32 %v425_v31, %v257_v35  ;;  %v497_v37 = vpop.f32.mrb[3].mxu1  ;;  %v261_v38 = vmax.f32 %v255_v33, 0.0 }
 0x204   :  { %v262_v39 = vmax.f32 %v258_v36, 0.0 }
 0x206   :  { %v263_v40 = vpack.c.bf16 %v262_v39, %v261_v38 }
 0x208   :  { %515 = vmatmul.mubr.bf16.vlgmr.msra.gmra.mrb[4].mxu0 %v263_v40 }
 0x2db   :  { %v369_v42 = vpop.f32.mrb[4].mxu0 }
 0x2dc   :  { %v370_v43 = vadd.f32 %v434_v41, %v369_v42  ;;  %v516_v44 = vpop.f32.mrb[5].mxu0 }
 0x2dd   :  { %v372_v45 = vpop.f32.mrb[6].mxu0 }
 0x2de   :  { %v380_v46 = vmax.f32 %v370_v43, -20.0  ;;  %v373_v47 = vadd.f32 %v434_v41, %v372_v45  ;;  %v517_v48 = vpop.f32.mrb[7].mxu0  ;;  %546 = vtanh.f32 %v370_v43 }
 0x2e0   :  { %v382_v49 = vmin.f32 %v380_v46, 2.0  ;;  %v381_v50 = vmax.f32 %v373_v47, -20.0 }
 0x2e2   :  { %v384_v51 = vmul.f32 1.442695, %v382_v49  ;;  %v383_v52 = vmin.f32 %v381_v50, 2.0 }
 0x2e4   :  { %548 = vpow2.f32 %v384_v51  ;;  %v386_v53 = vmul.f32 1.442695, %v383_v52 }
 0x2e5   :  { %550 = vtanh.f32 %v373_v47 }
 0x2e6   :  { %552 = vpow2.f32 %v386_v53 }
 0x2e8   :  { %v547_v56 = vpop.eup %546 }
 0x2ee   :  { %v549_v57 = vpop.eup %548 }
 0x2ef   :  { %v551_v58 = vpop.eup %550  ;;  %v391_v60 = vsel %vm388_vm2, %v547_v56, %v549_v57 }
 0x2f0   :  { %v553_v59 = vpop.eup %552 }
 0x2f1   :  { %v392_v61 = vsel %vm388_vm2, %v551_v58, %v553_v59 }
 0x2f2   :  { %v450_v62 = vpack.c.bf16 %v392_v61, %v391_v60 }
 0x2f4   :  { %451 = vst [vmem:[#allocation10] sm:$0xff] %v450_v62  }
 0x2f5   :  { %653 = shalt.err (!%p650_p8)
}
 0x2f6   :  { %s654_s14 = scalar_lea.hbm %s841_s7, 128 }
 0x2f7   :  { %p655_p9 = scmp.ne.s32.totalorder %s841_s7, %s654_s14  ;;  %p658_p10 = scmp.lt.u32.totalorder %s654_s14, %s841_s7 }
 0x2f9   :  { %p660_p11 = pnand %p658_p10, %p655_p9 }
 0x2fb   :  { %663 = shalt.err (!%p660_p11)
}
 0x2fc   :  { %414 = dma.vmem_to_hbm [thread:$0]  %s409_s6, 128, %s841_s7, [#allocation4], %s673_s11, %s673_s11, %s674_s12  }
 0x2fd   :  { %670 = dma.done.wait [#allocation4], 128  }
 0x2fe   :  { %671 = vsyncadd [#allocation4], 4294967168 }
 0x2ff   :  { %418 = vsyncpa [#allocation3], 1 }
 0x300   :  { %419 = vsyncpa [#allocation6], 1 }
 0x301   :  { %420 = vsyncpa [#allocation9], 1 }
 0x302   :  { %421 = vsyncpa [#allocation4], 1 }

</bundles_post_ra>
